<compile_context>
chip_gen: v5e
topology: v5e:2x2
jax: 0.10.0
libtpu: 0.0.40
codegen_flags: <defaults>
</compile_context>

<pallas_src>
import jax
import jax.numpy as jnp
import numpy as np
from jax.experimental import pallas as pl
from jax.experimental.pallas import tpu as pltpu

K = 7           # conv kernel size (module default)
PAD = K // 2    # = 3


def _fused_kernel(band_ref, x_ref, o_ref, ampad_ref):
    # band_ref:  (K, 2*HWp, HWp)        bf16 channel-fused banded RHS
    # x_ref:     (Nb, C, D, HWp)        input block (caller dtype)
    # o_ref:     (Nb, C, D, HWp)        output block (caller dtype)
    # ampad_ref: (Nb, D+2*PAD, 2*HWp)   bf16 scratch: [avg | max] maps, D halo padded
    nb, _, d, hwp = x_ref.shape

    # Hoisted broadcast (JAX does not CSE broadcast_in_dim inside the loop).
    halo_zeros = jnp.zeros((PAD, 2 * hwp), ampad_ref.dtype)

    for b in range(nb):
        # --- channel pooling straight into the D-padded scratch -------------
        # Zero only the 2*PAD halo rows each step (interior rows are fully
        # overwritten below).  NOT gated on program_id==0: that would break
        # under v7x megacore grid splitting.
        ampad_ref[b, pl.ds(0, PAD), :] = halo_zeros
        ampad_ref[b, pl.ds(PAD + d, PAD), :] = halo_zeros

        xb = x_ref[b]                                           # (C, D, HWp)
        avg = jnp.mean(xb.astype(jnp.float32), axis=0)          # f32 accumulate
        mx = jnp.max(xb, axis=0)
        ampad_ref[b, pl.ds(PAD, d), pl.ds(0, hwp)] = avg.astype(ampad_ref.dtype)
        ampad_ref[b, pl.ds(PAD, d), pl.ds(hwp, hwp)] = mx.astype(ampad_ref.dtype)

        # --- conv: K channel-fused banded matmuls, register accumulation ----
        acc = None
        for kd in range(K):
            part = jnp.dot(ampad_ref[b, pl.ds(kd, d), :],       # (D, 2*HWp) bf16
                           band_ref[kd],                        # (2*HWp, HWp) bf16
                           preferred_element_type=jnp.float32)
            acc = part if acc is None else acc + part

        # --- sigmoid gate; multiply in the caller's dtype (cast only attn) ---
        attn = jax.nn.sigmoid(acc)                              # (D, HWp) f32
        o_ref[b] = (x_ref[b] * attn[None].astype(o_ref.dtype)).astype(o_ref.dtype)


def _make_band(conv_weight, H, W, HWp, out_dtype=jnp.bfloat16):
    """(1, 2, K, K, K) conv weight -> (K, 2*HWp, HWp) channel-fused banded RHS.

    band[kd][c*HWp + h_in*W + w_in, h_out*W + w_out]
        = wt[c, kd, h_in - h_out + PAD, w_in - w_out + PAD]
    and zero outside the band (which implements the H/W zero padding); rows/cols
    beyond H*W (lane padding up to HWp) are zero.  Only the D halo is handled
    in-kernel via the padded scratch.

    TODO(synk): for larger H,W restructure to fold only the W taps (band becomes
    O(K*W^2)) and realize the H taps like the D taps via shifted reads; the
    current O(H^2*W^2) band is the scalability ceiling (v7x VMEM first).
    """
    HW = H * W
    wt = conv_weight[0].astype(jnp.float32)                     # (2, K, K, K)
    eyes_h = jnp.stack([jnp.eye(H, H, k=PAD - kh, dtype=jnp.float32)
                        for kh in range(K)])                    # (K, H, H)
    eyes_w = jnp.stack([jnp.eye(W, W, k=PAD - kw, dtype=jnp.float32)
                        for kw in range(K)])                    # (K, W, W)
    band = jnp.einsum('cdhw,hio,wjq->dcijoq', wt, eyes_h, eyes_w)  # (K,2,H,W,H,W)
    band = band.reshape(K, 2, HW, HW)
    if HWp != HW:
        band = jnp.pad(band, ((0, 0), (0, 0), (0, HWp - HW), (0, HWp - HW)))
    return band.reshape(K, 2 * HWp, HWp).astype(out_dtype)


def _largest_divisor_leq(n, cap):
    cap = max(1, min(int(n), int(cap)))
    for d in range(cap, 0, -1):
        if n % d == 0:
            return d
    return 1


def spatial_attention(x, conv_weight):
    """x: (N, C, D, H, W), any float dtype; conv_weight: (1, 2, K, K, K)."""
    N, C, D, H, W = x.shape
    HW = H * W
    HWp = ((HW + 127) // 128) * 128          # lane-dense last dim
    itemsize = jnp.dtype(x.dtype).itemsize

    # TODO(synk): in production, build the band once per weight update (outside
    # the per-step forward) instead of on every call.
    band = _make_band(conv_weight, H, W, HWp)                   # (K, 2*HWp, HWp) bf16

    x2d = x.reshape(N, C, D, HW)
    if HWp != HW:
        x2d = jnp.pad(x2d, ((0, 0), (0, 0), (0, 0), (0, HWp - HW)))

    # --- VMEM budget & batch-block (Nb) selection ----------------------------
    band_bytes = 2 * band.size * band.dtype.itemsize   # constant block, pipeline keeps 2 bufs
    per_b_io = 4 * C * D * HWp * itemsize               # double-buffered x block + o block
    per_b_scratch = (D + 2 * PAD) * 2 * HWp * 2          # bf16 ampad rows per batch element
    headroom = 4 << 20

    cap = 64 << 20                                       # conservative v7x per-core floor
    try:
        cap = int(pltpu.get_tpu_info().vmem_capacity_bytes)
    except Exception:
        pass                                             # keep the conservative default
    budget = max(min(cap, 128 << 20) - (12 << 20), 24 << 20)

    nb_vmem = max(1, (budget - band_bytes - headroom) // (per_b_io + per_b_scratch))
    nb_amort = -(-(1 << 20) // max(1, C * D * HWp * itemsize))  # move >= ~1 MiB per step
    nb = _largest_divisor_leq(N, min(nb_vmem, nb_amort))
    if N >= 2 and N // nb < 2:
        # Keep >= 2 parallel grid steps so both v7x TensorCores get work.
        nb = _largest_divisor_leq(N, N // 2)
    # TODO(synk): if N == 1 on v7x, add a second parallel axis (tile D) so both cores work.

    vmem_limit = int(min(max(band_bytes + nb * (per_b_io + per_b_scratch) + headroom,
                             16 << 20), budget))

    y2d = pl.pallas_call(
        _fused_kernel,
        out_shape=jax.ShapeDtypeStruct((N, C, D, HWp), x.dtype),
        grid_spec=pltpu.PrefetchScalarGridSpec(
            num_scalar_prefetch=0,
            grid=(N // nb,),
            in_specs=[
                # Constant block index: the pipeline re-uses the same resident band
                # tile each step (no re-fetch).  TODO(synk): single-buffer it
                # (pipeline_mode=pl.Buffered(1)) once validated on all generations.
                pl.BlockSpec((K, 2 * HWp, HWp), lambda n: (0, 0, 0)),
                pl.BlockSpec((nb, C, D, HWp), lambda n: (n, 0, 0, 0)),
            ],
            out_specs=pl.BlockSpec((nb, C, D, HWp), lambda n: (n, 0, 0, 0)),
            scratch_shapes=[
                pltpu.VMEM((nb, D + 2 * PAD, 2 * HWp), jnp.bfloat16),
            ],
        ),
        compiler_params=pltpu.CompilerParams(
            dimension_semantics=("parallel",),
            vmem_limit_bytes=vmem_limit),
    )(band, x2d)

    if HWp != HW:
        y2d = y2d[..., :HW]
    return y2d.reshape(N, C, D, H, W)


if __name__ == "__main__":
    key = jax.random.PRNGKey(0)
    kx, kw = jax.random.split(key)

    N, C, D, H, W = 2, 4, 8, 8, 16        # H*W = 128 -> exactly one lane width
    x = jax.random.normal(kx, (N, C, D, H, W), jnp.float32)
    # Conv3d(2, 1, 7, padding=3, bias=False) weight.
    conv_weight = jax.random.normal(kw, (1, 2, K, K, K), jnp.float32) * 0.05

    out = jax.block_until_ready(jax.jit(spatial_attention)(x, conv_weight))

    # Pure-JAX reference (mirrors the PyTorch forward).
    avg = jnp.mean(x, axis=1, keepdims=True)
    mx = jnp.max(x, axis=1, keepdims=True)
    am = jnp.concatenate([avg, mx], axis=1)
    attn = jax.lax.conv_general_dilated(
        am, conv_weight, window_strides=(1, 1, 1),
        padding=[(PAD, PAD)] * 3,
        dimension_numbers=('NCDHW', 'OIDHW', 'NCDHW'))
    ref = x * jax.nn.sigmoid(attn)

    # bf16 MXU operands (band + pooled maps) -> slightly looser tolerance than f32.
    np.testing.assert_allclose(np.asarray(out), np.asarray(ref), atol=1e-2, rtol=1e-2)
    assert out.dtype == x.dtype
    print("KERNEL_OK")
</pallas_src>

<mosaic_0001>
module attributes {stable_mosaic.version = 11 : i64} {
  func.func @_fused_kernel(%arg0: i32, %arg1: memref<7x256x128xbf16, #tpu.memory_space<vmem>>, %arg2: memref<1x4x8x128xf32, #tpu.memory_space<vmem>>, %arg3: memref<1x4x8x128xf32, #tpu.memory_space<vmem>>, %arg4: memref<1x14x256xbf16, #tpu.memory_space<vmem>>) attributes {dimension_semantics = [#tpu.dimension_semantics<parallel>], iteration_bounds = array<i64: 2>, scalar_prefetch = 0 : i64, scratch_operands = 1 : i64, tpu.core_type = #tpu.core_type<tc>, window_params = [{pipeline_mode = #tpu.pipeline_mode<synchronous>, transform_indices = @transform_0, window_bounds = array<i64: 7, 256, 128>}, {transform_indices = @transform_1, window_bounds = array<i64: 1, 4, 8, 128>}, {transform_indices = @transform_2, window_bounds = array<i64: 1, 4, 8, 128>}]} {
    %cst = arith.constant 0.000000e+00 : bf16
    %0 = vector.broadcast %cst : bf16 to vector<3x256xbf16>
    %c0 = arith.constant 0 : index
    %c0_0 = arith.constant 0 : index
    %c0_1 = arith.constant 0 : index
    %1 = vector.load %arg4[%c0, %c0_0, %c0_1] : memref<1x14x256xbf16, #tpu.memory_space<vmem>>, vector<1x3x256xbf16>
    %2 = vector.shape_cast %1 : vector<1x3x256xbf16> to vector<3x256xbf16>
    %3 = vector.shape_cast %0 : vector<3x256xbf16> to vector<1x3x256xbf16>
    tpu.vector_store %arg4[%c0, %c0_0, %c0_1], %3 {strides = array<i32>} : memref<1x14x256xbf16, #tpu.memory_space<vmem>>, vector<1x3x256xbf16>,
    %c0_2 = arith.constant 0 : index
    %c11 = arith.constant 11 : index
    %c0_3 = arith.constant 0 : index
    %4 = vector.load %arg4[%c0_2, %c11, %c0_3] : memref<1x14x256xbf16, #tpu.memory_space<vmem>>, vector<1x3x256xbf16>
    %5 = vector.shape_cast %4 : vector<1x3x256xbf16> to vector<3x256xbf16>
    %6 = vector.shape_cast %0 : vector<3x256xbf16> to vector<1x3x256xbf16>
    tpu.vector_store %arg4[%c0_2, %c11, %c0_3], %6 {strides = array<i32>} : memref<1x14x256xbf16, #tpu.memory_space<vmem>>, vector<1x3x256xbf16>,
    %c0_4 = arith.constant 0 : index
    %c0_5 = arith.constant 0 : index
    %c0_6 = arith.constant 0 : index
    %c0_7 = arith.constant 0 : index
    %7 = vector.load %arg2[%c0_4, %c0_5, %c0_6, %c0_7] : memref<1x4x8x128xf32, #tpu.memory_space<vmem>>, vector<1x4x8x128xf32>
    %8 = vector.shape_cast %7 : vector<1x4x8x128xf32> to vector<4x8x128xf32>
    %cst_8 = arith.constant dense<0.000000e+00> : vector<8x128xf32>
    %9 = vector.multi_reduction <add>, %8, %cst_8 [0] : vector<4x8x128xf32> to vector<8x128xf32>
    %cst_9 = arith.constant 4.000000e+00 : f32
    %10 = vector.broadcast %cst_9 : f32 to vector<8x128xf32>
    %11 = arith.divf %9, %10 : vector<8x128xf32>
    %cst_10 = arith.constant dense<0xFF800000> : vector<8x128xf32>
    %12 = vector.multi_reduction <maximumf>, %8, %cst_10 [0] : vector<4x8x128xf32> to vector<8x128xf32>
    %13 = arith.truncf %11 : vector<8x128xf32> to vector<8x128xbf16>
    %c0_11 = arith.constant 0 : index
    %c3 = arith.constant 3 : index
    %c0_12 = arith.constant 0 : index
    %14 = vector.load %arg4[%c0_11, %c3, %c0_12] : memref<1x14x256xbf16, #tpu.memory_space<vmem>>, vector<1x8x128xbf16>
    %15 = vector.shape_cast %14 : vector<1x8x128xbf16> to vector<8x128xbf16>
    %16 = vector.shape_cast %13 : vector<8x128xbf16> to vector<1x8x128xbf16>
    tpu.vector_store %arg4[%c0_11, %c3, %c0_12], %16 {strides = array<i32>} : memref<1x14x256xbf16, #tpu.memory_space<vmem>>, vector<1x8x128xbf16>,
    %17 = arith.truncf %12 : vector<8x128xf32> to vector<8x128xbf16>
    %c0_13 = arith.constant 0 : index
    %c3_14 = arith.constant 3 : index
    %c128 = arith.constant 128 : index
    %18 = vector.load %arg4[%c0_13, %c3_14, %c128] : memref<1x14x256xbf16, #tpu.memory_space<vmem>>, vector<1x8x128xbf16>
    %19 = vector.shape_cast %18 : vector<1x8x128xbf16> to vector<8x128xbf16>
    %20 = vector.shape_cast %17 : vector<8x128xbf16> to vector<1x8x128xbf16>
    tpu.vector_store %arg4[%c0_13, %c3_14, %c128], %20 {strides = array<i32>} : memref<1x14x256xbf16, #tpu.memory_space<vmem>>, vector<1x8x128xbf16>,
    %c0_15 = arith.constant 0 : index
    %c0_16 = arith.constant 0 : index
    %c0_17 = arith.constant 0 : index
    %21 = vector.load %arg4[%c0_15, %c0_16, %c0_17] : memref<1x14x256xbf16, #tpu.memory_space<vmem>>, vector<1x8x256xbf16>
    %22 = vector.shape_cast %21 : vector<1x8x256xbf16> to vector<8x256xbf16>
    %c0_18 = arith.constant 0 : index
    %c0_19 = arith.constant 0 : index
    %c0_20 = arith.constant 0 : index
    %23 = vector.load %arg1[%c0_18, %c0_19, %c0_20] : memref<7x256x128xbf16, #tpu.memory_space<vmem>>, vector<1x256x128xbf16>
    %24 = vector.shape_cast %23 : vector<1x256x128xbf16> to vector<256x128xbf16>
    %cst_21 = arith.constant dense<0.000000e+00> : vector<8x128xf32>
    %25 = tpu.matmul %22, %24, %cst_21 {dimension_numbers = #tpu.dot_dimension_numbers<[1], [0], [0], [1], [0, 0, 1, 1], [], []>} : vector<8x256xbf16>, vector<256x128xbf16>, vector<8x128xf32> -> vector<8x128xf32>
    %c0_22 = arith.constant 0 : index
    %c1 = arith.constant 1 : index
    %c0_23 = arith.constant 0 : index
    %26 = vector.load %arg4[%c0_22, %c1, %c0_23] : memref<1x14x256xbf16, #tpu.memory_space<vmem>>, vector<1x8x256xbf16>
    %27 = vector.shape_cast %26 : vector<1x8x256xbf16> to vector<8x256xbf16>
    %c1_24 = arith.constant 1 : index
    %c0_25 = arith.constant 0 : index
    %c0_26 = arith.constant 0 : index
    %28 = vector.load %arg1[%c1_24, %c0_25, %c0_26] : memref<7x256x128xbf16, #tpu.memory_space<vmem>>, vector<1x256x128xbf16>
    %29 = vector.shape_cast %28 : vector<1x256x128xbf16> to vector<256x128xbf16>
    %cst_27 = arith.constant dense<0.000000e+00> : vector<8x128xf32>
    %30 = tpu.matmul %27, %29, %cst_27 {dimension_numbers = #tpu.dot_dimension_numbers<[1], [0], [0], [1], [0, 0, 1, 1], [], []>} : vector<8x256xbf16>, vector<256x128xbf16>, vector<8x128xf32> -> vector<8x128xf32>
    %31 = arith.addf %25, %30 : vector<8x128xf32>
    %c0_28 = arith.constant 0 : index
    %c2 = arith.constant 2 : index
    %c0_29 = arith.constant 0 : index
    %32 = vector.load %arg4[%c0_28, %c2, %c0_29] : memref<1x14x256xbf16, #tpu.memory_space<vmem>>, vector<1x8x256xbf16>
    %33 = vector.shape_cast %32 : vector<1x8x256xbf16> to vector<8x256xbf16>
    %c2_30 = arith.constant 2 : index
    %c0_31 = arith.constant 0 : index
    %c0_32 = arith.constant 0 : index
    %34 = vector.load %arg1[%c2_30, %c0_31, %c0_32] : memref<7x256x128xbf16, #tpu.memory_space<vmem>>, vector<1x256x128xbf16>
    %35 = vector.shape_cast %34 : vector<1x256x128xbf16> to vector<256x128xbf16>
    %cst_33 = arith.constant dense<0.000000e+00> : vector<8x128xf32>
    %36 = tpu.matmul %33, %35, %cst_33 {dimension_numbers = #tpu.dot_dimension_numbers<[1], [0], [0], [1], [0, 0, 1, 1], [], []>} : vector<8x256xbf16>, vector<256x128xbf16>, vector<8x128xf32> -> vector<8x128xf32>
    %37 = arith.addf %31, %36 : vector<8x128xf32>
    %c0_34 = arith.constant 0 : index
    %c3_35 = arith.constant 3 : index
    %c0_36 = arith.constant 0 : index
    %38 = vector.load %arg4[%c0_34, %c3_35, %c0_36] : memref<1x14x256xbf16, #tpu.memory_space<vmem>>, vector<1x8x256xbf16>
    %39 = vector.shape_cast %38 : vector<1x8x256xbf16> to vector<8x256xbf16>
    %c3_37 = arith.constant 3 : index
    %c0_38 = arith.constant 0 : index
    %c0_39 = arith.constant 0 : index
    %40 = vector.load %arg1[%c3_37, %c0_38, %c0_39] : memref<7x256x128xbf16, #tpu.memory_space<vmem>>, vector<1x256x128xbf16>
    %41 = vector.shape_cast %40 : vector<1x256x128xbf16> to vector<256x128xbf16>
    %cst_40 = arith.constant dense<0.000000e+00> : vector<8x128xf32>
    %42 = tpu.matmul %39, %41, %cst_40 {dimension_numbers = #tpu.dot_dimension_numbers<[1], [0], [0], [1], [0, 0, 1, 1], [], []>} : vector<8x256xbf16>, vector<256x128xbf16>, vector<8x128xf32> -> vector<8x128xf32>
    %43 = arith.addf %37, %42 : vector<8x128xf32>
    %c0_41 = arith.constant 0 : index
    %c4 = arith.constant 4 : index
    %c0_42 = arith.constant 0 : index
    %44 = vector.load %arg4[%c0_41, %c4, %c0_42] : memref<1x14x256xbf16, #tpu.memory_space<vmem>>, vector<1x8x256xbf16>
    %45 = vector.shape_cast %44 : vector<1x8x256xbf16> to vector<8x256xbf16>
    %c4_43 = arith.constant 4 : index
    %c0_44 = arith.constant 0 : index
    %c0_45 = arith.constant 0 : index
    %46 = vector.load %arg1[%c4_43, %c0_44, %c0_45] : memref<7x256x128xbf16, #tpu.memory_space<vmem>>, vector<1x256x128xbf16>
    %47 = vector.shape_cast %46 : vector<1x256x128xbf16> to vector<256x128xbf16>
    %cst_46 = arith.constant dense<0.000000e+00> : vector<8x128xf32>
    %48 = tpu.matmul %45, %47, %cst_46 {dimension_numbers = #tpu.dot_dimension_numbers<[1], [0], [0], [1], [0, 0, 1, 1], [], []>} : vector<8x256xbf16>, vector<256x128xbf16>, vector<8x128xf32> -> vector<8x128xf32>
    %49 = arith.addf %43, %48 : vector<8x128xf32>
    %c0_47 = arith.constant 0 : index
    %c5 = arith.constant 5 : index
    %c0_48 = arith.constant 0 : index
    %50 = vector.load %arg4[%c0_47, %c5, %c0_48] : memref<1x14x256xbf16, #tpu.memory_space<vmem>>, vector<1x8x256xbf16>
    %51 = vector.shape_cast %50 : vector<1x8x256xbf16> to vector<8x256xbf16>
    %c5_49 = arith.constant 5 : index
    %c0_50 = arith.constant 0 : index
    %c0_51 = arith.constant 0 : index
    %52 = vector.load %arg1[%c5_49, %c0_50, %c0_51] : memref<7x256x128xbf16, #tpu.memory_space<vmem>>, vector<1x256x128xbf16>
    %53 = vector.shape_cast %52 : vector<1x256x128xbf16> to vector<256x128xbf16>
    %cst_52 = arith.constant dense<0.000000e+00> : vector<8x128xf32>
    %54 = tpu.matmul %51, %53, %cst_52 {dimension_numbers = #tpu.dot_dimension_numbers<[1], [0], [0], [1], [0, 0, 1, 1], [], []>} : vector<8x256xbf16>, vector<256x128xbf16>, vector<8x128xf32> -> vector<8x128xf32>
    %55 = arith.addf %49, %54 : vector<8x128xf32>
    %c0_53 = arith.constant 0 : index
    %c6 = arith.constant 6 : index
    %c0_54 = arith.constant 0 : index
    %56 = vector.load %arg4[%c0_53, %c6, %c0_54] : memref<1x14x256xbf16, #tpu.memory_space<vmem>>, vector<1x8x256xbf16>
    %57 = vector.shape_cast %56 : vector<1x8x256xbf16> to vector<8x256xbf16>
    %c6_55 = arith.constant 6 : index
    %c0_56 = arith.constant 0 : index
    %c0_57 = arith.constant 0 : index
    %58 = vector.load %arg1[%c6_55, %c0_56, %c0_57] : memref<7x256x128xbf16, #tpu.memory_space<vmem>>, vector<1x256x128xbf16>
    %59 = vector.shape_cast %58 : vector<1x256x128xbf16> to vector<256x128xbf16>
    %cst_58 = arith.constant dense<0.000000e+00> : vector<8x128xf32>
    %60 = tpu.matmul %57, %59, %cst_58 {dimension_numbers = #tpu.dot_dimension_numbers<[1], [0], [0], [1], [0, 0, 1, 1], [], []>} : vector<8x256xbf16>, vector<256x128xbf16>, vector<8x128xf32> -> vector<8x128xf32>
    %61 = arith.addf %55, %60 : vector<8x128xf32>
    %62 = arith.negf %61 : vector<8x128xf32>
    %63 = math.exp %62 : vector<8x128xf32>
    %cst_59 = arith.constant 1.000000e+00 : f32
    %64 = vector.broadcast %cst_59 : f32 to vector<8x128xf32>
    %65 = arith.addf %64, %63 : vector<8x128xf32>
    %66 = arith.divf %64, %65 : vector<8x128xf32>
    %c0_60 = arith.constant 0 : index
    %c0_61 = arith.constant 0 : index
    %c0_62 = arith.constant 0 : index
    %c0_63 = arith.constant 0 : index
    %67 = vector.load %arg2[%c0_60, %c0_61, %c0_62, %c0_63] : memref<1x4x8x128xf32, #tpu.memory_space<vmem>>, vector<1x4x8x128xf32>
    %68 = vector.shape_cast %67 : vector<1x4x8x128xf32> to vector<4x8x128xf32>
    %69 = vector.shape_cast %66 : vector<8x128xf32> to vector<1x8x128xf32>
    %70 = vector.broadcast %69 : vector<1x8x128xf32> to vector<4x8x128xf32>
    %71 = arith.mulf %68, %70 : vector<4x8x128xf32>
    %c0_64 = arith.constant 0 : index
    %c0_65 = arith.constant 0 : index
    %c0_66 = arith.constant 0 : index
    %c0_67 = arith.constant 0 : index
    %72 = vector.load %arg3[%c0_64, %c0_65, %c0_66, %c0_67] : memref<1x4x8x128xf32, #tpu.memory_space<vmem>>, vector<1x4x8x128xf32>
    %73 = vector.shape_cast %72 : vector<1x4x8x128xf32> to vector<4x8x128xf32>
    %74 = vector.shape_cast %71 : vector<4x8x128xf32> to vector<1x4x8x128xf32>
    tpu.vector_store %arg3[%c0_64, %c0_65, %c0_66, %c0_67], %74 {strides = array<i32>} : memref<1x4x8x128xf32, #tpu.memory_space<vmem>>, vector<1x4x8x128xf32>,
    return
  }
  func.func @transform_0(%arg0: i32) -> (i32, i32, i32) {
    %c0_i32 = arith.constant 0 : i32
    %c0_i32_0 = arith.constant 0 : i32
    %c0_i32_1 = arith.constant 0 : i32
    %c0_i32_2 = arith.constant 0 : i32
    return %c0_i32, %c0_i32_0, %c0_i32_1 : i32, i32, i32
  }
  func.func @transform_1(%arg0: i32) -> (i32, i32, i32, i32) {
    %c0_i32 = arith.constant 0 : i32
    %c0_i32_0 = arith.constant 0 : i32
    %c0_i32_1 = arith.constant 0 : i32
    %c0_i32_2 = arith.constant 0 : i32
    return %arg0, %c0_i32, %c0_i32_0, %c0_i32_1 : i32, i32, i32, i32
  }
  func.func @transform_2(%arg0: i32) -> (i32, i32, i32, i32) {
    %c0_i32 = arith.constant 0 : i32
    %c0_i32_0 = arith.constant 0 : i32
    %c0_i32_1 = arith.constant 0 : i32
    %c0_i32_2 = arith.constant 0 : i32
    return %arg0, %c0_i32, %c0_i32_0, %c0_i32_1 : i32, i32, i32, i32
  }
}

</mosaic_0001>

<bundles_post_ra>
// kernel: spatial_attention.1
= control target key start
LH: loop header
LB: loop body
LE: loop exit
PB: predicated region body
PF: predicated region fallthrough
CT: control target
= control target key end

     0   :  { %s2309_s9 = smov 0   ;;  %s2769_s0 = inlined_call_operand.vmem [shape: bf16[7,256,128], index: 0, kind: input, shape index: {}]   ;;  %s2770_s1 = inlined_call_operand.vmem [shape: f32[2,4,8,128], index: 1, kind: input, shape index: {}]   ;;  %s2771_s2 = inlined_call_operand.vmem [shape: f32[2,4,8,128], index: 2, kind: output, shape index: {}]  }
   0x1 LB: > { %s1504_s10 = sadd.s32 4294967295, %s2291_s9   ;;  %p1508_p0 = scmp.ge.s32.totalorder %s2291_s9, 1  ;;  %s2291_s9 = sphi %s2309_s9, %s12_s9  }
   0x2   : > { %p112_p1 = scmp.lt.s32.totalorder %s2291_s9, 3 }
   0x4   : > { %p113_p2 = pnand %p1508_p0, %p112_p1 }
   0x5   : > { %p134_p3 = scmp.lt.s32.totalorder (!%p113_p2), %s1504_s10, 1 }
   0x6   : > { %116 = sbr.rel (%p113_p2) target bundleno = 304 (0x130), region = 28 }
   0xb   : > { %v2181_v0 = vld [vmem:[%s2769_s0 + $0xb8] sm:$0xff]  ;;  %v2180_v4 = vld [vmem:[%s2769_s0 + $0xb0] sm:$0xff]  ;;  %v2179_v8 = vld [vmem:[%s2769_s0 + $0xa8] sm:$0xff]  ;;  %v2293_v10 = vmov 4.0   ;;  %s2779_s10 = smov (!%p134_p3, %s1504_s10), 1  ;;  %vm145_vm0 = vcmask 1041408  }
   0xc   : > { %v2189_v1 = vld [vmem:[%s2769_s0 + $0xf8] sm:$0xff]  ;;  %408 = vmatpush.bf16.msra.mxu0 %v2181_v0  ;;  %v2188_v5 = vld [vmem:[%s2769_s0 + $0xf0] sm:$0xff]  ;;  %v2187_v9 = vld [vmem:[%s2769_s0 + $0xe8] sm:$0xff]  ;;  %2279 = vrcp.f32 %v2293_v10  ;;  %s2156_s17 = sshll.u32 %s2779_s10, 5  ;;  %vm146_vm1 = vsmask.f32 1280 }
   0xd   : > { %v2165_v2 = vld [vmem:[%s2769_s0 + $0x38] sm:$0xff]  ;;  %421 = vmatpush.bf16.msra.mxu1 %v2189_v1  ;;  %v2164_v6 = vld [vmem:[%s2769_s0 + $0x30] sm:$0xff]  ;;  %v2163_v11 = vld [vmem:[%s2769_s0 + $0x28] sm:$0xff]  ;;  %s138_s24 = scalar_lea.vmem %s2770_s1, %s2156_s17  ;;  %vm148_vm2 = vcmask 1045508   ;;  %vm149_vm3 = vsmask.f32 5376  ;;  %s143_s14 = scalar_lea.vmem %s2771_s2, %s2156_s17 }
   0xe   : > { %v2173_v3 = vld [vmem:[%s2769_s0 + $0x78] sm:$0xff]  ;;  %534 = vmatpush.bf16.msra.mxu2 %v2165_v2  ;;  %v2172_v7 = vld [vmem:[%s2769_s0 + $0x70] sm:$0xff]  ;;  %v2171_v12 = vld [vmem:[%s2769_s0 + $0x68] sm:$0xff]  ;;  %vm155_vm5 = vcmask 1042433   ;;  %vm156_vm6 = vsmask.f32 7942 }
   0xf   : > { %547 = vmatpush.bf16.msra.mxu3 %v2173_v3  ;;  %v2178_v13 = vld [vmem:[%s2769_s0 + $0xa0] sm:$0xff]  ;;  %v2177_v19 = vld [vmem:[%s2769_s0 + $0x98] sm:$0xff]  ;;  %v2176_v24 = vld [vmem:[%s2769_s0 + $0x90] sm:$0xff]  ;;  %vm158_vm8 = vcmask 1046533   ;;  %vm159_vm9 = vsmask.f32 7958 }
  0x10   : > { %409 = vmatpush.bf16.msra.mxu0 %v2180_v4  ;;  %v2186_v14 = vld [vmem:[%s2769_s0 + $0xe0] sm:$0xff]  ;;  %v2185_v20 = vld [vmem:[%s2769_s0 + $0xd8] sm:$0xff]  ;;  %v2184_v25 = vld [vmem:[%s2769_s0 + $0xd0] sm:$0xff]  ;;  %vm195_vm15 = vcmask 1043457  }
  0x11   : > { %422 = vmatpush.bf16.msra.mxu1 %v2188_v5  ;;  %v2162_v15 = vld [vmem:[%s2769_s0 + $0x20] sm:$0xff]  ;;  %v2161_v21 = vld [vmem:[%s2769_s0 + $0x18] sm:$0xff]  ;;  %vm2393_vm4 = vmand %vm145_vm0, %vm146_vm1 }
  0x12   : > { %535 = vmatpush.bf16.msra.mxu2 %v2164_v6  ;;  %v2170_v16 = vld [vmem:[%s2769_s0 + $0x60] sm:$0xff]  ;;  %v2280_v17 = vpop.eup %2279  ;;  %v2169_v22 = vld [vmem:[%s2769_s0 + $0x58] sm:$0xff]  ;;  %v2160_v28 = vld [vmem:[%s2769_s0 + $0x10] sm:$0xff] }
  0x13   : > { %548 = vmatpush.bf16.msra.mxu3 %v2172_v7  ;;  %v173_v18 = vmul.f32 4.0, %v2280_v17  ;;  %v152_v27 = vld [vmem:[#allocation2] sm:$0x33]  ;;  %vm2400_vm7 = vmand %vm148_vm2, %vm149_vm3  ;;  %v2406_v31 = vld [vmem:[%s138_s24 + $0x8] sm:$0xff]  ;;  %vm177_vm11 = vweird.f32 %v2280_v17 }
  0x14   : > { %410 = vmatpush.bf16.msra.mxu0 %v2179_v8  ;;  %v2404_v30 = vld [vmem:[%s138_s24] sm:$0xff]  ;;  %vm151_vm10 = vmor %vm2400_vm7, %vm2393_vm4  ;;  %v2412_v33 = vld [vmem:[%s138_s24 + $0x10] sm:$0xff] }
  0x15   : > { %423 = vmatpush.bf16.msra.mxu1 %v2187_v9  ;;  %v174_v23 = vsub.f32 1.0, %v173_v18  ;;  %v2414_v34 = vld [vmem:[%s138_s24 + $0x18] sm:$0xff]  ;;  %v169_v35 = vadd.f32 %v2406_v31, %v2404_v30  ;;  %v180_v36 = vmax.f32 %v2404_v30, %v2406_v31  ;;  %v2168_v37 = vld [vmem:[%s2769_s0 + $0x50] sm:$0xff]  ;;  %v153_v38 = vsel %vm151_vm10, 0, %v152_v27  ;;  %vm157_vm12 = vmand %vm155_vm5, %vm156_vm6 }
  0x16   : > { %536 = vmatpush.bf16.msra.mxu2 %v2163_v11  ;;  %v162_v39 = vld [vmem:[#allocation2 + $0x8] sm:$0x66]  ;;  %v181_v41 = vmax.f32 %v2412_v33, %v2414_v34  ;;  %154 = vst [vmem:[#allocation2] sm:$0x33] %v153_v38  ;;  %vm160_vm13 = vmand %vm158_vm8, %vm159_vm9  ;;  %v2174_v55 = vld [vmem:[%s2769_s0 + $0x80] sm:$0xff] }
  0x17   : > { %549 = vmatpush.bf16.msra.mxu3 %v2171_v12  ;;  %v175_v32 = vmul.f32 %v2280_v17, %v174_v23  ;;  %v170_v42 = vadd.f32 %v169_v35, %v2412_v33  ;;  %vm161_vm14 = vmor %vm160_vm13, %vm157_vm12  ;;  %v2175_v45 = vld [vmem:[%s2769_s0 + $0x88] sm:$0xff]  ;;  %v2182_v56 = vld [vmem:[%s2769_s0 + $0xc0] sm:$0xff] }
  0x18   : > { %411 = vmatpush.bf16.msra.mxu0 %v2178_v13  ;;  %v182_v44 = vmax.f32 %v180_v36, %v181_v41  ;;  %v2183_v46 = vld [vmem:[%s2769_s0 + $0xc8] sm:$0xff]  ;;  %v163_v47 = vsel %vm161_vm14, 0, %v162_v39  ;;  %v2158_v58 = vld [vmem:[%s2769_s0] sm:$0xff]  ;;  %v2197_v60 = vld [vmem:[%s2769_s0 + $0x138] sm:$0xff] }
  0x19   : > { %424 = vmatpush.bf16.msra.mxu1 %v2186_v14  ;;  %v176_v40 = vadd.f32 %v2280_v17, %v175_v32  ;;  %v171_v48 = vadd.f32 %v170_v42, %v2414_v34  ;;  %v2159_v49 = vld [vmem:[%s2769_s0 + $0x8] sm:$0xff]  ;;  %164 = vst [vmem:[#allocation2 + $0x8] sm:$0x66] %v163_v47  ;;  %v2166_v59 = vld [vmem:[%s2769_s0 + $0x40] sm:$0xff]  ;;  %v2205_v63 = vld [vmem:[%s2769_s0 + $0x178] sm:$0xff] }
  0x1a   : > { %537 = vmatpush.bf16.msra.mxu2 %v2162_v15  ;;  %v2167_v50 = vld [vmem:[%s2769_s0 + $0x48] sm:$0xff]  ;;  %v203_v51 = vpack.c.bf16 %v182_v44, %v182_v44  ;;  %vm2463_vm0 = vmand %vm195_vm15, %vm156_vm6  ;;  %v2213_v4 = vld [vmem:[%s2769_s0 + $0x1b8] sm:$0xff] }
  0x1b   : > { %550 = vmatpush.bf16.msra.mxu3 %v2170_v16  ;;  %v178_v43 = vsel %vm177_vm11, %v2280_v17, %v176_v40  ;;  %v2221_v5 = vld [vmem:[%s2769_s0 + $0x1f8] sm:$0xff]  ;;  %v2196_v13 = vld [vmem:[%s2769_s0 + $0x130] sm:$0xff]  ;;  %v2203_v23 = vld [vmem:[%s2769_s0 + $0x168] sm:$0xff] }
  0x1c   : > { %412 = vmatpush.bf16.msra.mxu0 %v2177_v19  ;;  %v179_v52 = vmul.f32 %v178_v43, %v171_v48  ;;  %v205_v53 = vshrl.u32 %v203_v51, 16  ;;  %v208_v54 = vshll.u32 %v203_v51, 16  ;;  %v2204_v14 = vld [vmem:[%s2769_s0 + $0x170] sm:$0xff]  ;;  %v2219_v27 = vld [vmem:[%s2769_s0 + $0x1e8] sm:$0xff]  ;;  %v2202_v26 = vld [vmem:[%s2769_s0 + $0x160] sm:$0xff] }
  0x1d   : > { %425 = vmatpush.bf16.msra.mxu1 %v2185_v20  ;;  %v215_v3 = vld [vmem:[#allocation2 + $0x4] sm:$0xe]  ;;  %v197_v10 = vld [vmem:[#allocation2] sm:$0xe]  ;;  %v2212_v16 = vld [vmem:[%s2769_s0 + $0x1b0] sm:$0xff] }
  0x1e   : > { %538 = vmatpush.bf16.msra.mxu2 %v2161_v21  ;;  %v183_v57 = vpack.c.bf16 %v179_v52, %v179_v52  ;;  %v207_v61 = vrot.slane %v205_v53, 6  ;;  %v210_v62 = vrot.slane %v208_v54, 7  ;;  %v2220_v17 = vld [vmem:[%s2769_s0 + $0x1f0] sm:$0xff]  ;;  %v2210_v29 = vld [vmem:[%s2769_s0 + $0x1a0] sm:$0xff]  ;;  %v2193_v39 = vld [vmem:[%s2769_s0 + $0x118] sm:$0xff] }
  0x1f   : > { %551 = vmatpush.bf16.msra.mxu3 %v2169_v22  ;;  %v2195_v22 = vld [vmem:[%s2769_s0 + $0x128] sm:$0xff]  ;;  %v2218_v32 = vld [vmem:[%s2769_s0 + $0x1e0] sm:$0xff]  ;;  %v2201_v40 = vld [vmem:[%s2769_s0 + $0x158] sm:$0xff] }
  0x20   : > { %413 = vmatpush.bf16.msra.mxu0 %v2176_v24  ;;  %v185_v0 = vshrl.u32 %v183_v57, 16  ;;  %v188_v1 = vshll.u32 %v183_v57, 16  ;;  %v211_v6 = vor.u32 %v210_v62, %v207_v61  ;;  %v218_v9 = vld [vmem:[#allocation2 + $0xc] sm:$0x3]  ;;  %v200_v18 = vld [vmem:[#allocation2 + $0x8] sm:$0x3] }
  0x21   : > { %426 = vmatpush.bf16.msra.mxu1 %v2184_v25  ;;  %v2211_v25 = vld [vmem:[%s2769_s0 + $0x1a8] sm:$0xff]  ;;  %v2209_v47 = vld [vmem:[%s2769_s0 + $0x198] sm:$0xff] }
  0x22   : > { %539 = vmatpush.bf16.msra.mxu2 %v2160_v28  ;;  %v187_v7 = vrot.slane %v185_v0, 6  ;;  %v190_v8 = vrot.slane %v188_v1, 7  ;;  %v212_v11 = vrot.slane %v211_v6, 4  ;;  %v216_v12 = vsel %vm2463_vm0, %v211_v6, %v215_v3  ;;  %v2194_v28 = vld [vmem:[%s2769_s0 + $0x120] sm:$0xff]  ;;  %v2217_v48 = vld [vmem:[%s2769_s0 + $0x1d8] sm:$0xff]  ;;  %v2216_v0 = vld [vmem:[%s2769_s0 + $0x1d0] sm:$0xff] }
  0x23   : > { %552 = vmatpush.bf16.msra.mxu3 %v2168_v37  ;;  %217 = vst [vmem:[#allocation2 + $0x4] sm:$0xe] %v216_v12  ;;  %v2191_v3 = vld [vmem:[%s2769_s0 + $0x108] sm:$0xff] }
  0x24   : > { %414 = vmatpush.bf16.msra.mxu0 %v2175_v45  ;;  %v191_v15 = vor.u32 %v190_v8, %v187_v7  ;;  %v219_v19 = vsel %vm2393_vm4, %v212_v11, %v218_v9  ;;  %v2207_v11 = vld [vmem:[%s2769_s0 + $0x188] sm:$0xff] }
  0x25   : > { %427 = vmatpush.bf16.msra.mxu1 %v2183_v46  ;;  %220 = vst [vmem:[#allocation2 + $0xc] sm:$0x3] %v219_v19  ;;  %v2215_v12 = vld [vmem:[%s2769_s0 + $0x1c8] sm:$0xff]  ;;  %v2206_v19 = vld [vmem:[%s2769_s0 + $0x180] sm:$0xff] }
  0x26   : > { %540 = vmatpush.bf16.msra.mxu2 %v2159_v49  ;;  %v192_v20 = vrot.slane %v191_v15, 4  ;;  %v198_v21 = vsel %vm2463_vm0, %v191_v15, %v197_v10 }
  0x27   : > { %553 = vmatpush.bf16.msra.mxu3 %v2167_v50  ;;  %199 = vst [vmem:[#allocation2] sm:$0xe] %v198_v21  ;;  %v2229_v21 = vld [vmem:[%s2769_s0 + $0x238] sm:$0xff] }
  0x28   : > { %415 = vmatpush.bf16.msra.mxu0 %v2174_v55  ;;  %v201_v24 = vsel %vm2393_vm4, %v192_v20, %v200_v18  ;;  %v2192_v55 = vld [vmem:[%s2769_s0 + $0x110] sm:$0xff]  ;;  %v2214_v20 = vld [vmem:[%s2769_s0 + $0x1c0] sm:$0xff] }
  0x29   : > { %428 = vmatpush.bf16.msra.mxu1 %v2182_v56  ;;  %202 = vst [vmem:[#allocation2 + $0x8] sm:$0x3] %v201_v24  ;;  %v2200_v56 = vld [vmem:[%s2769_s0 + $0x150] sm:$0xff]  ;;  %v2253_v24 = vld [vmem:[%s2769_s0 + $0x2f8] sm:$0xff] }
  0x2a   : > { %541 = vmatpush.bf16.msra.mxu2 %v2158_v58 }
  0x2b   : > { %554 = vmatpush.bf16.msra.mxu3 %v2166_v59 }
  0x2c   : > { %699 = vmatpush.bf16.msrb.mxu0 %v2197_v60 }
  0x2d   : > { %712 = vmatpush.bf16.msrb.mxu1 %v2205_v63  ;;  %v2208_v63 = vld [vmem:[%s2769_s0 + $0x190] sm:$0xff] }
  0x2e   : > { %879 = vmatpush.bf16.msrb.mxu2 %v2213_v4  ;;  %v221_v35 = vld [vmem:[#allocation2] sm:$0xff]  ;;  %v2199_v4 = vld [vmem:[%s2769_s0 + $0x148] sm:$0xff] }
  0x2f   : > { %892 = vmatpush.bf16.msrb.mxu3 %v2221_v5  ;;  %v2517_v36 = vld [vmem:[#allocation2] sm:$0xee]  ;;  %v290_v37 = vunpack.c.l.b16 %v221_v35  ;;  %v291_v38 = vunpack.c.h.b16 %v221_v35  ;;  %v2244_v35 = vld [vmem:[%s2769_s0 + $0x2b0] sm:$0xff] }
  0x30   : > { %700 = vmatpush.bf16.msrb.mxu0 %v2196_v13  ;;  %v2525_v41 = vld [vmem:[#allocation2 + $0x8] sm:$0x11]  ;;  %v595_v42 = vunpack.c.l.b16 %v2517_v36  ;;  %v596_v44 = vunpack.c.h.b16 %v2517_v36  ;;  %v2190_v13 = vld [vmem:[%s2769_s0 + $0x100] sm:$0xff] }
  0x31   : > { %713 = vmatpush.bf16.msrb.mxu1 %v2204_v14  ;;  %v2528_v43 = vld [vmem:[#allocation2 + $0x8] sm:$0x33]  ;;  %v434_v45 = vpack.c.b16 %v290_v37, %v290_v37  ;;  %v435_v46 = vpack.c.b16 %v291_v38, %v291_v38  ;;  %v292_v49 = vunpack.c.l.b16 %v2525_v41  ;;  %v293_v50 = vunpack.c.h.b16 %v2525_v41  ;;  %v2198_v14 = vld [vmem:[%s2769_s0 + $0x140] sm:$0xff] }
  0x32   : > { %880 = vmatpush.bf16.msrb.mxu2 %v2212_v16  ;;  %v761_v51 = vunpack.c.l.b16 %v2528_v43  ;;  %v762_v52 = vunpack.c.h.b16 %v2528_v43  ;;  %v2235_v36 = vld [vmem:[%s2769_s0 + $0x268] sm:$0xff] }
  0x33   : > { %893 = vmatpush.bf16.msrb.mxu3 %v2220_v17  ;;  %542 = vmatmul.bf16.vlgmr.msra.gmra.mxu2 %v434_v45  ;;  %v294_v53 = vpack.c.b16 %v292_v49, %v290_v37  ;;  %v295_v54 = vpack.c.b16 %v293_v50, %v291_v38  ;;  %v2252_v37 = vld [vmem:[%s2769_s0 + $0x2f0] sm:$0xff]  ;;  %v2227_v38 = vld [vmem:[%s2769_s0 + $0x228] sm:$0xff]  ;;  %v2234_v45 = vld [vmem:[%s2769_s0 + $0x260] sm:$0xff] }
  0x34   : > { %701 = vmatpush.bf16.msrb.mxu0 %v2195_v22  ;;  %555 = vmatmul.bf16.vlgmr.msra.gmra.mxu3 %v435_v46  ;;  %v763_v57 = vpack.c.b16 %v761_v51, %v595_v42  ;;  %v764_v58 = vpack.c.b16 %v762_v52, %v596_v44  ;;  %v2237_v22 = vld [vmem:[%s2769_s0 + $0x278] sm:$0xff]  ;;  %v2243_v41 = vld [vmem:[%s2769_s0 + $0x2a8] sm:$0xff]  ;;  %v2242_v46 = vld [vmem:[%s2769_s0 + $0x2a0] sm:$0xff] }
  0x35   : > { %714 = vmatpush.bf16.msrb.mxu1 %v2203_v23  ;;  %v297_v59 = vshrl.u32 %v294_v53, 16  ;;  %v299_v60 = vshll.u32 %v294_v53, 16  ;;  %v304_v61 = vshrl.u32 %v295_v54, 16  ;;  %v306_v62 = vshll.u32 %v295_v54, 16  ;;  %v2245_v23 = vld [vmem:[%s2769_s0 + $0x2b8] sm:$0xff] }
  0x36   : > { %881 = vmatpush.bf16.msrb.mxu2 %v2211_v25  ;;  %v766_v5 = vshrl.u32 %v763_v57, 16  ;;  %v769_v6 = vshll.u32 %v763_v57, 16  ;;  %v774_v7 = vshrl.u32 %v764_v58, 16  ;;  %v777_v8 = vshll.u32 %v764_v58, 16  ;;  %v2233_v53 = vld [vmem:[%s2769_s0 + $0x258] sm:$0xff] }
  0x37   : > { %894 = vmatpush.bf16.msrb.mxu3 %v2219_v27  ;;  %v301_v1 = vrot.slane %v299_v60, 1  ;;  %v308_v2 = vrot.slane %v306_v62, 1  ;;  %v2241_v58 = vld [vmem:[%s2769_s0 + $0x298] sm:$0xff]  ;;  %v2224_v60 = vld [vmem:[%s2769_s0 + $0x210] sm:$0xff] }
  0x38   : > { %702 = vmatpush.bf16.msrb.mxu0 %v2194_v28  ;;  %v768_v15 = vrot.slane %v766_v5, 1  ;;  %v771_v16 = vrot.slane %v769_v6, 2  ;;  %v776_v17 = vrot.slane %v774_v7, 1  ;;  %v779_v18 = vrot.slane %v777_v8, 2  ;;  %v2228_v28 = vld [vmem:[%s2769_s0 + $0x230] sm:$0xff]  ;;  %v2239_v8 = vld [vmem:[%s2769_s0 + $0x288] sm:$0xff] }
  0x39   : > { %715 = vmatpush.bf16.msrb.mxu1 %v2202_v26  ;;  %v302_v9 = vor.u32 %v301_v1, %v297_v59  ;;  %v309_v10 = vor.u32 %v308_v2, %v304_v61  ;;  %v2236_v26 = vld [vmem:[%s2769_s0 + $0x270] sm:$0xff]  ;;  %v2249_v59 = vld [vmem:[%s2769_s0 + $0x2d8] sm:$0xff]  ;;  %v2223_v2 = vld [vmem:[%s2769_s0 + $0x208] sm:$0xff] }
  0x3a   : > { %882 = vmatpush.bf16.msrb.mxu2 %v2210_v29  ;;  %v772_v25 = vor.u32 %v771_v16, %v768_v15  ;;  %v780_v27 = vor.u32 %v779_v18, %v776_v17  ;;  %v597_v29 = vpack.c.b16 %v292_v49, %v595_v42  ;;  %v2251_v42 = vld [vmem:[%s2769_s0 + $0x2e8] sm:$0xff]  ;;  %v2232_v61 = vld [vmem:[%s2769_s0 + $0x250] sm:$0xff]  ;;  %v2238_v17 = vld [vmem:[%s2769_s0 + $0x280] sm:$0xff] }
  0x3b   : > { %895 = vmatpush.bf16.msrb.mxu3 %v2218_v32  ;;  %416 = vmatmul.bf16.vlgmr.msra.gmra.mxu0 %v302_v9  ;;  %v598_v32 = vpack.c.b16 %v293_v50, %v596_v44  ;;  %v2226_v44 = vld [vmem:[%s2769_s0 + $0x220] sm:$0xff]  ;;  %v2645_v49 = vld [vmem:[#allocation2 + $0x8] sm:$0x77]  ;;  %v2225_v50 = vld [vmem:[%s2769_s0 + $0x218] sm:$0xff] }
  0x3c   : > { %703 = vmatpush.bf16.msrb.mxu0 %v2193_v39  ;;  %429 = vmatmul.bf16.vlgmr.msra.gmra.mxu1 %v309_v10  ;;  %v599_v39 = vrot.slane %v597_v29, 1  ;;  %v1108_v57 = vunpack.c.h.b16 %v2645_v49  ;;  %v2248_v1 = vld [vmem:[%s2769_s0 + $0x2d0] sm:$0xff]  ;;  %v2247_v9 = vld [vmem:[%s2769_s0 + $0x2c8] sm:$0xff]  ;;  %v2246_v18 = vld [vmem:[%s2769_s0 + $0x2c0] sm:$0xff] }
  0x3d   : > { %716 = vmatpush.bf16.msrb.mxu1 %v2201_v40  ;;  %v600_v40 = vrot.slane %v598_v32, 1  ;;  %v2257_v29 = vld [vmem:[%s2769_s0 + $0x318] sm:$0xff] }
  0x3e   : > { %883 = vmatpush.bf16.msrb.mxu2 %v2209_v47  ;;  %v2250_v47 = vld [vmem:[%s2769_s0 + $0x2e0] sm:$0xff]  ;;  %v2265_v32 = vld [vmem:[%s2769_s0 + $0x358] sm:$0xff] }
  0x3f   : > { %896 = vmatpush.bf16.msrb.mxu3 %v2217_v48  ;;  %v906_v48 = vld [vmem:[#allocation2] sm:$0xcc] }
  0x40   : > { %704 = vmatpush.bf16.msrb.mxu0 %v2192_v55  ;;  %v941_v54 = vunpack.c.l.b16 %v906_v48  ;;  %v942_v55 = vunpack.c.h.b16 %v906_v48 }
  0x41   : > { %717 = vmatpush.bf16.msrb.mxu1 %v2200_v56  ;;  %v1107_v56 = vunpack.c.l.b16 %v2645_v49 }
  0x42   : > { %884 = vmatpush.bf16.msrb.mxu2 %v2208_v63  ;;  %v1110_v63 = vpack.c.b16 %v1108_v57, %v942_v55  ;;  %v943_v10 = vpack.c.b16 %v761_v51, %v941_v54  ;;  %v2269_v51 = vld [vmem:[%s2769_s0 + $0x378] sm:$0xff] }
  0x43   : > { %897 = vmatpush.bf16.msrb.mxu3 %v2216_v0  ;;  %v1109_v62 = vpack.c.b16 %v1107_v56, %v941_v54  ;;  %v2240_v0 = vld [vmem:[%s2769_s0 + $0x290] sm:$0xff] }
  0x44   : > { %705 = vmatpush.bf16.msrb.mxu0 %v2191_v3  ;;  %v2231_v3 = vld [vmem:[%s2769_s0 + $0x248] sm:$0xff]  ;;  %v1120_v6 = vshrl.u32 %v1110_v63, 16  ;;  %v1123_v7 = vshll.u32 %v1110_v63, 16 }
  0x45   : > { %718 = vmatpush.bf16.msrb.mxu1 %v2199_v4  ;;  %v1112_v4 = vshrl.u32 %v1109_v62, 16  ;;  %v1115_v5 = vshll.u32 %v1109_v62, 16 }
  0x46   : > { %885 = vmatpush.bf16.msrb.mxu2 %v2207_v11  ;;  %v944_v11 = vpack.c.b16 %v762_v52, %v942_v55  ;;  %v1122_v15 = vrot.slane %v1120_v6, 2  ;;  %v1125_v16 = vrot.slane %v1123_v7, 3 }
  0x47   : > { %898 = vmatpush.bf16.msrb.mxu3 %v2215_v12  ;;  %v2222_v12 = vld [vmem:[%s2769_s0 + $0x200] sm:$0xff]  ;;  %v1114_v43 = vrot.slane %v1112_v4, 2  ;;  %v1117_v52 = vrot.slane %v1115_v5, 3 }
  0x48   : > { %706 = vmatpush.bf16.msrb.mxu0 %v2190_v13  ;;  %v2230_v13 = vld [vmem:[%s2769_s0 + $0x240] sm:$0xff] }
  0x49   : > { %719 = vmatpush.bf16.msrb.mxu1 %v2198_v14  ;;  %v2261_v14 = vld [vmem:[%s2769_s0 + $0x338] sm:$0xff] }
  0x4a   : > { %886 = vmatpush.bf16.msrb.mxu2 %v2206_v19  ;;  %v945_v19 = vrot.slane %v943_v10, 2 }
  0x4b   : > { %899 = vmatpush.bf16.msrb.mxu3 %v2214_v20  ;;  %707 = vmatmul.bf16.vlgmr.msrb.gmra.mxu0 %v599_v39  ;;  %v946_v20 = vrot.slane %v944_v11, 2 }
  0x4c   : > { %1045 = vmatpush.bf16.msra.mxu0 %v2229_v21  ;;  %720 = vmatmul.bf16.vlgmr.msrb.gmra.mxu1 %v600_v40  ;;  %v1118_v21 = vor.u32 %v1117_v52, %v1114_v43  ;;  %v2255_v40 = vld [vmem:[%s2769_s0 + $0x308] sm:$0xff] }
  0x4d   : > { %1058 = vmatpush.bf16.msra.mxu1 %v2237_v22  ;;  %887 = vmatmul.bf16.vlgmr.msrb.gmra.mxu2 %v772_v25  ;;  %v1126_v22 = vor.u32 %v1125_v16, %v1122_v15  ;;  %v2259_v25 = vld [vmem:[%s2769_s0 + $0x328] sm:$0xff] }
  0x4e   : > { %1225 = vmatpush.bf16.msra.mxu2 %v2245_v23  ;;  %900 = vmatmul.bf16.vlgmr.msrb.gmra.mxu3 %v780_v27  ;;  %v2260_v23 = vld [vmem:[%s2769_s0 + $0x330] sm:$0xff]  ;;  %v2267_v27 = vld [vmem:[%s2769_s0 + $0x368] sm:$0xff] }
  0x4f   : > { %1238 = vmatpush.bf16.msra.mxu3 %v2253_v24  ;;  %v2268_v24 = vld [vmem:[%s2769_s0 + $0x370] sm:$0xff] }
  0x50   : > { %1046 = vmatpush.bf16.msra.mxu0 %v2228_v28  ;;  %v2258_v28 = vld [vmem:[%s2769_s0 + $0x320] sm:$0xff] }
  0x51   : > { %1059 = vmatpush.bf16.msra.mxu1 %v2236_v26  ;;  %v2266_v26 = vld [vmem:[%s2769_s0 + $0x360] sm:$0xff] }
  0x52   : > { %1226 = vmatpush.bf16.msra.mxu2 %v2244_v35  ;;  %v2256_v35 = vld [vmem:[%s2769_s0 + $0x310] sm:$0xff] }
  0x53   : > { %1239 = vmatpush.bf16.msra.mxu3 %v2252_v37  ;;  %v2264_v37 = vld [vmem:[%s2769_s0 + $0x350] sm:$0xff] }
  0x54   : > { %1047 = vmatpush.bf16.msra.mxu0 %v2227_v38  ;;  %v1252_v38 = vld [vmem:[#allocation2] sm:$0x88] }
  0x55   : > { %1060 = vmatpush.bf16.msra.mxu1 %v2235_v36  ;;  %v1287_v36 = vunpack.c.l.b16 %v1252_v38  ;;  %v1288_v39 = vunpack.c.h.b16 %v1252_v38 }
  0x56   : > { %1227 = vmatpush.bf16.msra.mxu2 %v2243_v41  ;;  %v2263_v41 = vld [vmem:[%s2769_s0 + $0x348] sm:$0xff] }
  0x57   : > { %1240 = vmatpush.bf16.msra.mxu3 %v2251_v42  ;;  %v1289_v42 = vpack.c.b16 %v1107_v56, %v1287_v36 }
  0x58   : > { %1048 = vmatpush.bf16.msra.mxu0 %v2226_v44  ;;  %v1290_v44 = vpack.c.b16 %v1108_v57, %v1288_v39 }
  0x59   : > { %1061 = vmatpush.bf16.msra.mxu1 %v2234_v45  ;;  %v2254_v45 = vld [vmem:[%s2769_s0 + $0x300] sm:$0xff] }
  0x5a   : > { %1228 = vmatpush.bf16.msra.mxu2 %v2242_v46  ;;  %v2262_v46 = vld [vmem:[%s2769_s0 + $0x340] sm:$0xff]  ;;  %v1292_v48 = vrot.slane %v1290_v44, 3 }
  0x5b   : > { %1241 = vmatpush.bf16.msra.mxu3 %v2250_v47  ;;  %v1291_v47 = vrot.slane %v1289_v42, 3 }
  0x5c   : > { %1049 = vmatpush.bf16.msra.mxu0 %v2225_v50 }
  0x5d   : > { %1062 = vmatpush.bf16.msra.mxu1 %v2233_v53 }
  0x5e   : > { %1229 = vmatpush.bf16.msra.mxu2 %v2241_v58 }
  0x5f   : > { %1242 = vmatpush.bf16.msra.mxu3 %v2249_v59 }
  0x60   : > { %1050 = vmatpush.bf16.msra.mxu0 %v2224_v60 }
  0x61   : > { %1063 = vmatpush.bf16.msra.mxu1 %v2232_v61 }
  0x62   : > { %1230 = vmatpush.bf16.msra.mxu2 %v2240_v0 }
  0x63   : > { %1243 = vmatpush.bf16.msra.mxu3 %v2248_v1 }
  0x64   : > { %1051 = vmatpush.bf16.msra.mxu0 %v2223_v2 }
  0x65   : > { %1064 = vmatpush.bf16.msra.mxu1 %v2231_v3 }
  0x66   : > { %1231 = vmatpush.bf16.msra.mxu2 %v2239_v8 }
  0x67   : > { %1244 = vmatpush.bf16.msra.mxu3 %v2247_v9 }
  0x68   : > { %1052 = vmatpush.bf16.msra.mxu0 %v2222_v12 }
  0x69   : > { %1065 = vmatpush.bf16.msra.mxu1 %v2230_v13 }
  0x6a   : > { %1232 = vmatpush.bf16.msra.mxu2 %v2238_v17 }
  0x6b   : > { %1245 = vmatpush.bf16.msra.mxu3 %v2246_v18  ;;  %1053 = vmatmul.bf16.vlgmr.msra.gmra.mxu0 %v945_v19 }
  0x6c   : > { %1391 = vmatpush.bf16.msrb.mxu0 %v2261_v14  ;;  %1066 = vmatmul.bf16.vlgmr.msra.gmra.mxu1 %v946_v20 }
  0x6d   : > { %1404 = vmatpush.bf16.msrb.mxu1 %v2269_v51  ;;  %1233 = vmatmul.bf16.vlgmr.msra.gmra.mxu2 %v1118_v21 }
  0x6e   : > { %1246 = vmatmul.bf16.vlgmr.msra.gmra.mxu3 %v1126_v22 }
  0x70   : > { %1392 = vmatpush.bf16.msrb.mxu0 %v2260_v23 }
  0x71   : > { %1405 = vmatpush.bf16.msrb.mxu1 %v2268_v24 }
  0x74   : > { %1393 = vmatpush.bf16.msrb.mxu0 %v2259_v25 }
  0x75   : > { %1406 = vmatpush.bf16.msrb.mxu1 %v2267_v27 }
  0x78   : > { %1394 = vmatpush.bf16.msrb.mxu0 %v2258_v28 }
  0x79   : > { %1407 = vmatpush.bf16.msrb.mxu1 %v2266_v26 }
  0x7c   : > { %1395 = vmatpush.bf16.msrb.mxu0 %v2257_v29 }
  0x7d   : > { %1408 = vmatpush.bf16.msrb.mxu1 %v2265_v32 }
  0x80   : > { %1396 = vmatpush.bf16.msrb.mxu0 %v2256_v35 }
  0x81   : > { %1409 = vmatpush.bf16.msrb.mxu1 %v2264_v37 }
  0x84   : > { %1397 = vmatpush.bf16.msrb.mxu0 %v2255_v40 }
  0x85   : > { %1410 = vmatpush.bf16.msrb.mxu1 %v2263_v41 }
  0x88   : > { %1398 = vmatpush.bf16.msrb.mxu0 %v2254_v45 }
  0x89   : > { %1411 = vmatpush.bf16.msrb.mxu1 %v2262_v46 }
  0x8b   : > { %1399 = vmatmul.bf16.vlgmr.msrb.gmra.mxu0 %v1291_v47 }
  0x8c   : > { %1412 = vmatmul.bf16.vlgmr.msrb.gmra.mxu1 %v1292_v48 }
  0xb6   : > { %v543_v50 = vpop.f32.mrf.mxu2 }
  0xb7   : > { %v556_v53 = vpop.f32.mrf.mxu3 }
  0xb8   : > { %v417_v49 = vpop.f32.mrf.mxu0 }
  0xb9   : > { %v430_v54 = vpop.f32.mrf.mxu1 }
  0xba   : > { %v431_v9 = vadd.f32 %v430_v54, %v417_v49 }
  0xbc   : > { %v544_v12 = vadd.f32 %v543_v50, %v431_v9 }
  0xbe   : > { %v545_v55 = vpop.f32.mrf.mxu2  ;;  %v557_v13 = vadd.f32 %v556_v53, %v544_v12 }
  0xbf   : > { %v558_v56 = vpop.f32.mrf.mxu3 }
  0xc0   : > { %v419_v57 = vpop.f32.mrf.mxu0 }
  0xc1   : > { %v432_v58 = vpop.f32.mrf.mxu1 }
  0xc8   : > { %v708_v61 = vpop.f32.mrf.mxu0 }
  0xc9   : > { %v721_v62 = vpop.f32.mrf.mxu1 }
  0xca   : > { %v722_v14 = vadd.f32 %v721_v62, %v708_v61 }
  0xcc   : > { %v725_v43 = vadd.f32 %v722_v14, %v557_v13 }
  0xd0   : > { %v888_v59 = vpop.f32.mrf.mxu2  ;;  %v710_v1 = vpop.f32.mrf.mxu0 }
  0xd1   : > { %v901_v60 = vpop.f32.mrf.mxu3  ;;  %v723_v2 = vpop.f32.mrf.mxu1 }
  0xd2   : > { %v902_v51 = vadd.f32 %v901_v60, %v888_v59 }
  0xd4   : > { %v905_v15 = vadd.f32 %v902_v51, %v725_v43 }
  0xd8   : > { %v890_v63 = vpop.f32.mrf.mxu2 }
  0xd9   : > { %v903_v0 = vpop.f32.mrf.mxu3 }
  0xe8   : > { %v1054_v3 = vpop.f32.mrf.mxu0 }
  0xe9   : > { %v1067_v4 = vpop.f32.mrf.mxu1 }
  0xea   : > { %v1068_v52 = vadd.f32 %v1067_v4, %v1054_v3 }
  0xec   : > { %v1071_v17 = vadd.f32 %v1068_v52, %v905_v15 }
  0xf0   : > { %v1234_v5 = vpop.f32.mrf.mxu2  ;;  %v1056_v7 = vpop.f32.mrf.mxu0 }
  0xf1   : > { %v1247_v6 = vpop.f32.mrf.mxu3  ;;  %v1069_v8 = vpop.f32.mrf.mxu1 }
  0xf2   : > { %v1248_v16 = vadd.f32 %v1247_v6, %v1234_v5 }
  0xf4   : > { %v1251_v20 = vadd.f32 %v1248_v16, %v1071_v17 }
  0xf8   : > { %v1236_v10 = vpop.f32.mrf.mxu2 }
  0xf9   : > { %v1249_v11 = vpop.f32.mrf.mxu3 }
 0x108   : > { %v1400_v18 = vpop.f32.mrf.mxu0 }
 0x109   : > { %v1413_v19 = vpop.f32.mrf.mxu1 }
 0x10a   : > { %v1414_v21 = vadd.f32 %v1413_v19, %v1400_v18 }
 0x10c   : > { %v1417_v22 = vadd.f32 %v1414_v21, %v1251_v20 }
 0x10e   : > { %v2153_v23 = vmul.f32 -1.442695, %v1417_v22 }
 0x110   : > { %2281 = vpow2.f32 %v2153_v23  ;;  %v1402_v24 = vpop.f32.mrf.mxu0 }
 0x111   : > { %v1415_v25 = vpop.f32.mrf.mxu1 }
 0x116   : > { %v2282_v27 = vpop.eup %2281 }
 0x117   : > { %v1421_v28 = vadd.f32 1.0, %v2282_v27 }
 0x119   : > { %2283 = vrcp.f32 %v1421_v28  ;;  %v1433_v35 = vand.u32 2147483648, %v1421_v28  ;;  %v1431_v38 = vand.u32 2147483647, %v1421_v28  ;;  %vm1427_vm2 = vweird.f32 %v1421_v28 }
 0x11b   : > { %v1434_v39 = vor.u32 1.1754944e-38, %v1433_v35  ;;  %vm1432_vm4 = vcmp.eq.f32.partialorder %v1431_v38, 8.507059e+37 }
 0x11f   : > { %v2284_v26 = vpop.eup %2283 }
 0x120   : > { %v1423_v29 = vmul.f32 %v2284_v26, %v1421_v28  ;;  %vm1428_vm1 = vweird.f32 %v2284_v26 }
 0x121   : > { %vm1429_vm3 = vmor %vm1427_vm2, %vm1428_vm1 }
 0x122   : > { %v1424_v32 = vsub.f32 1.0, %v1423_v29 }
 0x124   : > { %v1425_v37 = vmul.f32 %v2284_v26, %v1424_v32 }
 0x126   : > { %v1426_v36 = vadd.f32 %v2284_v26, %v1425_v37 }
 0x128   : > { %v1430_v40 = vsel %vm1429_vm3, %v2284_v26, %v1426_v36 }
 0x129   : > { %v1435_v41 = vsel %vm1432_vm4, %v1434_v39, %v1430_v40 }
 0x12a   : > { %v1441_v42 = vmul.f32 %v1435_v41, %v2404_v30  ;;  %v1442_v44 = vmul.f32 %v1435_v41, %v2406_v31  ;;  %v1443_v45 = vmul.f32 %v1435_v41, %v2412_v33  ;;  %v1444_v46 = vmul.f32 %v1435_v41, %v2414_v34 }
 0x12c   : > { %1445 = vst [vmem:[%s143_s14] sm:$0xff] %v1441_v42 }
 0x12d   : > { %1446 = vst [vmem:[%s143_s14 + $0x8] sm:$0xff] %v1442_v44 }
 0x12e   : > { %1447 = vst [vmem:[%s143_s14 + $0x10] sm:$0xff] %v1443_v45 }
 0x12f   : > { %1448 = vst [vmem:[%s143_s14 + $0x18] sm:$0xff] %v1444_v46 }
 0x130 PF: > { %s12_s9 = sadd.s32 1, %s2291_s9  }
 0x131   : > { %p9_p4 = scmp.ge.s32.totalorder %s12_s9, 4  }
 0x133   :  { %11 = sbr.rel (!%p9_p4) target bundleno = 1 (0x1), region = 64 }

</bundles_post_ra>
